<compile_context>
chip_gen: v6e
topology: v6e:2x2x1
jax: 0.10.0
libtpu: 0.0.40
codegen_flags: <defaults>
</compile_context>

<pallas_src>
import functools

import jax
import jax.numpy as jnp
from jax.experimental import pallas as pl
from jax.experimental.pallas import tpu as pltpu


_NUM_F32_TEMPS = 4  # live [rows, C] f32 intermediates after the algebraic fusion


def _round_up(x: int, m: int) -> int:
    return ((x + m - 1) // m) * m


def _cdiv(a: int, b: int) -> int:
    return -(-a // b)


def _vmem_capacity_bytes() -> int:
    """Per-TensorCore VMEM capacity; falls back to the smallest (v7x) value."""
    try:
        return int(pltpu.get_tpu_info().vmem_capacity_bytes)
    except Exception:
        return 64 << 20


# ---------------------------------------------------------------------------
# Kernel bodies
# ---------------------------------------------------------------------------

def _tile_kl_sum(s_ref, t_ref, *, tile_idx, inv_temperature, tile_rows,
                 total_rows, mask_padded_rows, approx_reciprocal):
    """Sum over this batch tile of sum_c p_t * (log p_t - log p_s) -> (1,1) f32."""
    s = s_ref[...].astype(jnp.float32) * inv_temperature   # student logits / T
    t = t_ref[...].astype(jnp.float32) * inv_temperature   # teacher logits / T

    if mask_padded_rows:
        # Zero padded rows *before* exp/log: a zero row is uniform-vs-uniform,
        # whose KL is exactly 0, and it can never produce inf/NaN, so the
        # reduction needs no later masking regardless of op ordering.
        row_ids = tile_idx * tile_rows + jax.lax.broadcasted_iota(
            jnp.int32, (tile_rows, 1), 0)
        valid = row_ids < total_rows
        s = jnp.where(valid, s, 0.0)
        t = jnp.where(valid, t, 0.0)

    # Student log-softmax pieces (lane-axis reductions).
    s_max = jnp.max(s, axis=1, keepdims=True)
    s_shift = s - s_max
    s_lse = jnp.log(jnp.sum(jnp.exp(s_shift), axis=1, keepdims=True))   # [TB,1]

    # Teacher softmax pieces (the softmax itself is never materialized).
    t_max = jnp.max(t, axis=1, keepdims=True)
    t_shift = t - t_max
    t_exp = jnp.exp(t_shift)
    t_sum = jnp.sum(t_exp, axis=1, keepdims=True)                        # [TB,1]

    # Fused KL algebra (uses sum_c p_t == 1):
    #   sum_c p_t * (log p_t - log p_s)
    #     = (1/t_sum) * sum_c t_exp * (t_shift - s_shift) + (s_lse - log t_sum)
    # so log_p_s, log_p_t and the [TB,C] difference-product are never stored.
    prod_sum = jnp.sum(t_exp * (t_shift - s_shift), axis=1, keepdims=True)

    if approx_reciprocal:
        inv_t_sum = pl.reciprocal(t_sum, approx=True)   # EUP slot; ~1e-3 rel err
    else:
        inv_t_sum = 1.0 / t_sum
    row_kl = prod_sum * inv_t_sum + (s_lse - jnp.log(t_sum))             # [TB,1]

    return jnp.sum(row_kl, keepdims=True)                                # (1,1)


def _distill_kl_acc_kernel(s_ref, t_ref, o_ref, *, inv_temperature, scale,
                           tile_rows, total_rows, mask_padded_rows,
                           approx_reciprocal):
    """Accumulator variant (default; best on single-TC v5e/v6e, safe everywhere).

    Grid axis is "arbitrary"; the loss accumulates in the resident (1,1) output
    block and the T^2/B scale is folded into the last grid step.
    """
    i = pl.program_id(0)
    tile_sum = _tile_kl_sum(
        s_ref, t_ref, tile_idx=i, inv_temperature=inv_temperature,
        tile_rows=tile_rows, total_rows=total_rows,
        mask_padded_rows=mask_padded_rows, approx_reciprocal=approx_reciprocal)

    @pl.when(i == 0)
    def _():
        o_ref[...] = jnp.zeros_like(o_ref)

    o_ref[...] += tile_sum

    @pl.when(i == pl.num_programs(0) - 1)
    def _():
        o_ref[...] = o_ref[...] * scale


def _distill_kl_partial_kernel(s_ref, t_ref, o_ref, *, inv_temperature,
                               tile_rows, total_rows, mask_padded_rows,
                               approx_reciprocal):
    """Parallel-partials variant (for v7x dual-TC sharding).

    Each grid step owns its own fully tile-aligned (1, 8, 128) output block
    (unmasked stores), grid axis "parallel"; the wrapper sums num_tiles scalars.
    """
    i = pl.program_id(0)
    tile_sum = _tile_kl_sum(
        s_ref, t_ref, tile_idx=i, inv_temperature=inv_temperature,
        tile_rows=tile_rows, total_rows=total_rows,
        mask_padded_rows=mask_padded_rows, approx_reciprocal=approx_reciprocal)
    o_ref[...] = jnp.broadcast_to(tile_sum.reshape(1, 1, 1), o_ref.shape)


# ---------------------------------------------------------------------------
# Tiling / VMEM heuristics
# ---------------------------------------------------------------------------

def _choose_tile_rows(B: int, C: int, itemsize: int, working_budget: int) -> int:
    # Per-row working-set bytes: 2 inputs x 2 pipeline buffers at input dtype,
    # plus ~_NUM_F32_TEMPS live [rows, C] f32 temporaries inside the kernel.
    bytes_per_row = 4 * C * itemsize + _NUM_F32_TEMPS * C * 4
    rows = working_budget // max(1, bytes_per_row)

    if rows >= B:
        if B <= 8:
            return B                       # single tile; block == full array dim
        # Whole batch fits: still split into >=2 tiles so the DMA pipeline
        # overlaps tile i+1 with tile i compute (and, with parallel_partials,
        # v7x's two TensorCores both get work).
        return max(8, _round_up(_cdiv(B, 2), 8))

    rows = max(8, (int(rows) // 8) * 8)    # sublane-aligned
    # TODO(synk): for vocab-scale C (32k-256k classes) even an 8-row tile blows
    # the VMEM budget; add an inner class-axis grid dim with an online
    # (flash-style) logsumexp accumulator instead of shrinking rows further.
    num_tiles = _cdiv(B, rows)
    # Rebalance so tiles are roughly equal-sized (less ragged last tile).
    return max(8, _round_up(_cdiv(B, num_tiles), 8))


# ---------------------------------------------------------------------------
# Public wrapper
# ---------------------------------------------------------------------------

def distill_kl(features_1_logits, features_2_logits, T: float = 4.0, *,
               tile_rows: int | None = None,
               parallel_partials: bool = False,
               approx_reciprocal: bool = True):
    """KL distillation loss. Inputs: [B, C] logits (student, teacher).

    parallel_partials=True emits per-tile partial sums with a "parallel" grid
    (useful on v7x to shard tiles across both TensorCores); the default
    accumulates the loss in-kernel with an "arbitrary" grid (best on v5e/v6e).
    approx_reciprocal uses the EUP approximate reciprocal for 1/sum(exp(t));
    set False for exact-division semantics.
    """
    assert features_1_logits.ndim == 2 and features_2_logits.ndim == 2
    assert features_1_logits.shape == features_2_logits.shape
    assert features_1_logits.dtype == features_2_logits.dtype
    B, C = features_1_logits.shape
    itemsize = jnp.dtype(features_1_logits.dtype).itemsize

    # Generation-aware working-set budget: ~1/3 of per-core VMEM, clamped so it
    # is conservative on v7x (64 MiB) but still grows tiles on v5e/v6e (128 MiB).
    vmem_cap = _vmem_capacity_bytes()
    working_budget = min(max(vmem_cap // 3, 16 << 20), 48 << 20)

    if tile_rows is None:
        tile_rows = _choose_tile_rows(B, C, itemsize, working_budget)
    tile_rows = min(int(tile_rows), B)
    assert tile_rows == B or tile_rows % 8 == 0, (
        "tile_rows must equal B or be a multiple of 8")

    num_tiles = _cdiv(B, tile_rows)
    mask_padded_rows = (B % tile_rows) != 0
    scale = float(T) * float(T) / float(B)

    # Scoped-VMEM limit: inputs (2 arrays x 2 pipeline buffers) + live f32
    # intermediates + slack; clamped to <= 3/4 of physical VMEM (<=48 MiB on v7x).
    in_bytes = 4 * tile_rows * C * itemsize
    tmp_bytes = _NUM_F32_TEMPS * tile_rows * C * 4
    needed = in_bytes + tmp_bytes + (2 << 20)
    vmem_limit = int(min(max(needed, 16 << 20), min(vmem_cap * 3 // 4, 96 << 20)))

    common = dict(
        inv_temperature=1.0 / float(T),
        tile_rows=tile_rows,
        total_rows=B,
        mask_padded_rows=mask_padded_rows,
        approx_reciprocal=approx_reciprocal,
    )
    in_specs = [
        pl.BlockSpec((tile_rows, C), lambda i: (i, 0)),
        pl.BlockSpec((tile_rows, C), lambda i: (i, 0)),
    ]

    if parallel_partials:
        kernel = functools.partial(_distill_kl_partial_kernel, **common)
        partials = pl.pallas_call(
            kernel,
            out_shape=jax.ShapeDtypeStruct((num_tiles, 8, 128), jnp.float32),
            grid_spec=pltpu.PrefetchScalarGridSpec(
                num_scalar_prefetch=0,
                grid=(num_tiles,),
                in_specs=in_specs,
                out_specs=pl.BlockSpec((1, 8, 128), lambda i: (i, 0, 0)),
            ),
            compiler_params=pltpu.CompilerParams(
                dimension_semantics=("parallel",),
                vmem_limit_bytes=vmem_limit,
            ),
        )(features_1_logits, features_2_logits)
        # Tiny final reduction over num_tiles scalars + T^2/B scale.
        return jnp.sum(partials[:, 0, 0]) * scale

    kernel = functools.partial(_distill_kl_acc_kernel, scale=scale, **common)
    out = pl.pallas_call(
        kernel,
        out_shape=jax.ShapeDtypeStruct((1, 1), jnp.float32),
        grid_spec=pltpu.PrefetchScalarGridSpec(
            num_scalar_prefetch=0,
            grid=(num_tiles,),
            in_specs=in_specs,
            # Block dims == full array dims -> resident accumulator output.
            out_specs=pl.BlockSpec((1, 1), lambda i: (0, 0)),
        ),
        compiler_params=pltpu.CompilerParams(
            dimension_semantics=("arbitrary",),
            vmem_limit_bytes=vmem_limit,
        ),
    )(features_1_logits, features_2_logits)
    return out[0, 0]


# ---------------------------------------------------------------------------
# Reference + tests
# ---------------------------------------------------------------------------

def _reference(f1, f2, T=4.0):
    f1 = f1.astype(jnp.float32)
    f2 = f2.astype(jnp.float32)
    p_s = jax.nn.log_softmax(f1 / T, axis=1)
    log_p_t = jax.nn.log_softmax(f2 / T, axis=1)
    p_t = jnp.exp(log_p_t)
    kl = jnp.sum(p_t * (log_p_t - p_s))
    return kl * (T ** 2) / f1.shape[0]


if __name__ == "__main__":
    key = jax.random.PRNGKey(0)

    # Case 1: single tile (B=8, C=128), accumulator variant.
    k1, k2, key = jax.random.split(key, 3)
    s1 = jax.random.normal(k1, (8, 128), dtype=jnp.float32)
    t1 = jax.random.normal(k2, (8, 128), dtype=jnp.float32)
    loss1 = distill_kl(s1, t1, T=4.0)
    jax.block_until_ready(loss1)
    ref1 = _reference(s1, t1, T=4.0)
    assert jnp.allclose(loss1, ref1, rtol=5e-3, atol=1e-5), (loss1, ref1)

    # Case 2: multi-tile grid with a ragged (zero-padded) last tile,
    # accumulator variant (B=20, tile_rows=8 -> 3 tiles).
    k3, k4, key = jax.random.split(key, 3)
    s2 = jax.random.normal(k3, (20, 128), dtype=jnp.float32)
    t2 = jax.random.normal(k4, (20, 128), dtype=jnp.float32)
    loss2 = distill_kl(s2, t2, T=4.0, tile_rows=8)
    jax.block_until_ready(loss2)
    ref2 = _reference(s2, t2, T=4.0)
    assert jnp.allclose(loss2, ref2, rtol=5e-3, atol=1e-5), (loss2, ref2)

    # Case 3: same data through the parallel-partials (v7x-oriented) variant.
    loss3 = distill_kl(s2, t2, T=4.0, tile_rows=8, parallel_partials=True)
    jax.block_until_ready(loss3)
    assert jnp.allclose(loss3, ref2, rtol=5e-3, atol=1e-5), (loss3, ref2)

    # Case 4: bf16 inputs, auto tiling (2 x 16-row tiles), exact reciprocal.
    k5, k6, key = jax.random.split(key, 3)
    s3 = jax.random.normal(k5, (32, 256), dtype=jnp.bfloat16)
    t3 = jax.random.normal(k6, (32, 256), dtype=jnp.bfloat16)
    loss4 = distill_kl(s3, t3, T=4.0, approx_reciprocal=False)
    jax.block_until_ready(loss4)
    ref4 = _reference(s3, t3, T=4.0)
    assert jnp.allclose(loss4, ref4, rtol=5e-3, atol=1e-5), (loss4, ref4)

    print("KERNEL_OK")
</pallas_src>

<mosaic_0001>
module attributes {stable_mosaic.version = 11 : i64} {
  func.func @_distill_kl_acc_kernel(%arg0: i32, %arg1: memref<8x128xf32, #tpu.memory_space<vmem>>, %arg2: memref<8x128xf32, #tpu.memory_space<vmem>>, %arg3: memref<1x1xf32, #tpu.memory_space<vmem>>) attributes {dimension_semantics = [#tpu.dimension_semantics<arbitrary>], iteration_bounds = array<i64: 1>, scalar_prefetch = 0 : i64, scratch_operands = 0 : i64, tpu.core_type = #tpu.core_type<tc>, window_params = [{transform_indices = @transform_0, window_bounds = array<i64: 8, 128>}, {transform_indices = @transform_1, window_bounds = array<i64: 8, 128>}, {pipeline_mode = #tpu.pipeline_mode<synchronous>, transform_indices = @transform_2, window_bounds = array<i64: 1, 1>}]} {
    %c0 = arith.constant 0 : index
    %c0_0 = arith.constant 0 : index
    %0 = vector.load %arg1[%c0, %c0_0] : memref<8x128xf32, #tpu.memory_space<vmem>>, vector<8x128xf32>
    %cst = arith.constant 2.500000e-01 : f32
    %1 = vector.broadcast %cst : f32 to vector<8x128xf32>
    %2 = arith.mulf %0, %1 : vector<8x128xf32>
    %c0_1 = arith.constant 0 : index
    %c0_2 = arith.constant 0 : index
    %3 = vector.load %arg2[%c0_1, %c0_2] : memref<8x128xf32, #tpu.memory_space<vmem>>, vector<8x128xf32>
    %cst_3 = arith.constant 2.500000e-01 : f32
    %4 = vector.broadcast %cst_3 : f32 to vector<8x128xf32>
    %5 = arith.mulf %3, %4 : vector<8x128xf32>
    %cst_4 = arith.constant dense<0xFF800000> : vector<8xf32>
    %6 = vector.multi_reduction <maximumf>, %2, %cst_4 [1] : vector<8x128xf32> to vector<8xf32>
    %7 = vector.shape_cast %6 : vector<8xf32> to vector<8x1xf32>
    %8 = vector.broadcast %7 : vector<8x1xf32> to vector<8x128xf32>
    %9 = arith.subf %2, %8 : vector<8x128xf32>
    %10 = math.exp %9 : vector<8x128xf32>
    %cst_5 = arith.constant dense<0.000000e+00> : vector<8xf32>
    %11 = vector.multi_reduction <add>, %10, %cst_5 [1] : vector<8x128xf32> to vector<8xf32>
    %12 = vector.shape_cast %11 : vector<8xf32> to vector<8x1xf32>
    %13 = math.log %12 : vector<8x1xf32>
    %cst_6 = arith.constant dense<0xFF800000> : vector<8xf32>
    %14 = vector.multi_reduction <maximumf>, %5, %cst_6 [1] : vector<8x128xf32> to vector<8xf32>
    %15 = vector.shape_cast %14 : vector<8xf32> to vector<8x1xf32>
    %16 = vector.broadcast %15 : vector<8x1xf32> to vector<8x128xf32>
    %17 = arith.subf %5, %16 : vector<8x128xf32>
    %18 = math.exp %17 : vector<8x128xf32>
    %cst_7 = arith.constant dense<0.000000e+00> : vector<8xf32>
    %19 = vector.multi_reduction <add>, %18, %cst_7 [1] : vector<8x128xf32> to vector<8xf32>
    %20 = vector.shape_cast %19 : vector<8xf32> to vector<8x1xf32>
    %21 = arith.subf %17, %9 : vector<8x128xf32>
    %22 = arith.mulf %18, %21 : vector<8x128xf32>
    %cst_8 = arith.constant dense<0.000000e+00> : vector<8xf32>
    %23 = vector.multi_reduction <add>, %22, %cst_8 [1] : vector<8x128xf32> to vector<8xf32>
    %24 = vector.shape_cast %23 : vector<8xf32> to vector<8x1xf32>
    %25 = tpu.reciprocal %20 {approx = true} : vector<8x1xf32> -> vector<8x1xf32>
    %26 = arith.mulf %24, %25 : vector<8x1xf32>
    %27 = math.log %20 : vector<8x1xf32>
    %28 = arith.subf %13, %27 : vector<8x1xf32>
    %29 = arith.addf %26, %28 : vector<8x1xf32>
    %30 = vector.shape_cast %29 : vector<8x1xf32> to vector<1x8x1xf32>
    %cst_9 = arith.constant dense<0.000000e+00> : vector<1xf32>
    %31 = vector.multi_reduction <add>, %30, %cst_9 [1, 2] : vector<1x8x1xf32> to vector<1xf32>
    %32 = vector.shape_cast %31 : vector<1xf32> to vector<1x1x1xf32>
    %33 = vector.extract %32[0, 0, 0] : f32 from vector<1x1x1xf32>
    %34 = vector.broadcast %33 : f32 to vector<1x1xf32>
    %c0_i32 = arith.constant 0 : i32
    %35 = arith.cmpi eq, %arg0, %c0_i32 : i32
    %36 = arith.extui %35 : i1 to i32
    %c0_i32_10 = arith.constant 0 : i32
    %37 = arith.cmpi ne, %36, %c0_i32_10 : i32
    scf.if %37 {
      %cst_17 = arith.constant 0.000000e+00 : f32
      %44 = vector.broadcast %cst_17 : f32 to vector<1x1xf32>
      %c0_18 = arith.constant 0 : index
      %c0_19 = arith.constant 0 : index
      %45 = vector.load %arg3[%c0_18, %c0_19] : memref<1x1xf32, #tpu.memory_space<vmem>>, vector<1x1xf32>
      tpu.vector_store %arg3[%c0_18, %c0_19], %44 {strides = array<i32>} : memref<1x1xf32, #tpu.memory_space<vmem>>, vector<1x1xf32>,
    } else {
    }
    %c0_11 = arith.constant 0 : index
    %c0_12 = arith.constant 0 : index
    %38 = vector.load %arg3[%c0_11, %c0_12] : memref<1x1xf32, #tpu.memory_space<vmem>>, vector<1x1xf32>
    %39 = arith.addf %38, %34 : vector<1x1xf32>
    %c0_13 = arith.constant 0 : index
    %c0_14 = arith.constant 0 : index
    %40 = vector.load %arg3[%c0_13, %c0_14] : memref<1x1xf32, #tpu.memory_space<vmem>>, vector<1x1xf32>
    tpu.vector_store %arg3[%c0_13, %c0_14], %39 {strides = array<i32>} : memref<1x1xf32, #tpu.memory_space<vmem>>, vector<1x1xf32>,
    %c0_i32_15 = arith.constant 0 : i32
    %41 = arith.cmpi eq, %arg0, %c0_i32_15 : i32
    %42 = arith.extui %41 : i1 to i32
    %c0_i32_16 = arith.constant 0 : i32
    %43 = arith.cmpi ne, %42, %c0_i32_16 : i32
    scf.if %43 {
      %c0_17 = arith.constant 0 : index
      %c0_18 = arith.constant 0 : index
      %44 = vector.load %arg3[%c0_17, %c0_18] : memref<1x1xf32, #tpu.memory_space<vmem>>, vector<1x1xf32>
      %cst_19 = arith.constant 2.000000e+00 : f32
      %45 = vector.broadcast %cst_19 : f32 to vector<1x1xf32>
      %46 = arith.mulf %44, %45 : vector<1x1xf32>
      %c0_20 = arith.constant 0 : index
      %c0_21 = arith.constant 0 : index
      %47 = vector.load %arg3[%c0_20, %c0_21] : memref<1x1xf32, #tpu.memory_space<vmem>>, vector<1x1xf32>
      tpu.vector_store %arg3[%c0_20, %c0_21], %46 {strides = array<i32>} : memref<1x1xf32, #tpu.memory_space<vmem>>, vector<1x1xf32>,
    } else {
    }
    return
  }
  func.func @transform_0(%arg0: i32) -> (i32, i32) {
    %c0_i32 = arith.constant 0 : i32
    %c0_i32_0 = arith.constant 0 : i32
    return %arg0, %c0_i32 : i32, i32
  }
  func.func @transform_1(%arg0: i32) -> (i32, i32) {
    %c0_i32 = arith.constant 0 : i32
    %c0_i32_0 = arith.constant 0 : i32
    return %arg0, %c0_i32 : i32, i32
  }
  func.func @transform_2(%arg0: i32) -> (i32, i32) {
    %c0_i32 = arith.constant 0 : i32
    %c0_i32_0 = arith.constant 0 : i32
    %c0_i32_1 = arith.constant 0 : i32
    return %c0_i32, %c0_i32_0 : i32, i32
  }
}

</mosaic_0001>

<bundles_post_ra>
// kernel: tpu_custom_call.1
= control target key start
LH: loop header
LB: loop body
LE: loop exit
PB: predicated region body
PF: predicated region fallthrough
CT: control target
= control target key end

     0   :  { %7 = vsyncpa [#allocation3], 0  ;;  %s223_s0 = inlined_call_operand.hbm [shape: f32[8,128], index: 0, kind: input, shape index: {}]   ;;  %s224_s1 = inlined_call_operand.hbm [shape: f32[8,128], index: 1, kind: input, shape index: {}]   ;;  %s225_s2 = inlined_call_operand.hbm [shape: f32[1,1], index: 2, kind: output, shape index: {}]  }
   0x1   :  { %8 = vsyncpa [#allocation6], 0 }
   0x2   :  { %9 = vsyncpa [#allocation4], 0  ;;  %s192_s9 = smov [#allocation2]   ;;  %s193_s11 = smov [#allocation5]  }
   0x3   :  { %s16_s10 = sshll.u32 %s192_s9, 4  ;;  %s26_s12 = sshll.u32 %s193_s11, 4  ;;  %s17_s10 = int_to_ptr.vmem [resolvable:$true] %s16_s10  ;;  %s27_s12 = int_to_ptr.vmem [resolvable:$true] %s26_s12 }
   0x4   :  { %s134_s13 = scalar_lea.vmem %s17_s10, 128  ;;  %p139_p1 = scmp.lt.s32.totalorder %s17_s10, %s17_s10 }
   0x5   :  { %p135_p0 = scmp.ne.s32.totalorder %s17_s10, %s134_s13  ;;  %p140_p2 = scmp.lt.s32.totalorder %s134_s13, %s134_s13 }
   0x7   :  { %p141_p3 = por %p140_p2, %p139_p1 }
   0x9   :  { %p142_p4 = pnand %p141_p3, %p135_p0 }
   0xb   :  { %145 = shalt.err (!%p142_p4)
}
   0xc   :  { %19 = dma.hbm_to_vmem [thread:$0]  %s223_s0, 128, %s17_s10, [#allocation3]  }
   0xd   :  { %s154_s16 = scalar_lea.vmem %s27_s12, 128  ;;  %p159_p6 = scmp.lt.s32.totalorder %s27_s12, %s27_s12 }
   0xe   :  { %p155_p5 = scmp.ne.s32.totalorder %s27_s12, %s154_s16  ;;  %p160_p7 = scmp.lt.s32.totalorder %s154_s16, %s154_s16 }
  0x10   :  { %p161_p8 = por %p160_p7, %p159_p6 }
  0x12   :  { %p162_p9 = pnand %p161_p8, %p155_p5 }
  0x14   :  { %165 = shalt.err (!%p162_p9)
}
  0x15   :  { %29 = dma.hbm_to_vmem [thread:$0]  %s224_s1, 128, %s27_s12, [#allocation6]  }
  0x16   :  { %186 = dma.done.wait [#allocation3], 128  }
  0x17   :  { %187 = vsyncadd [#allocation3], 4294967168 }
  0x18   :  { %188 = dma.done.wait [#allocation6], 128  }
  0x19   :  { %189 = vsyncadd [#allocation6], 4294967168  ;;  %v36_v0 = vld [vmem:[#allocation2] sm:$0xff]  ;;  %v38_v1 = vld [vmem:[#allocation5] sm:$0xff]  ;;  %vm66_vm0 = vcmask 7168   ;;  %vm82_vm1 = vcmask 0  }
  0x1a   :  { %v37_v2 = vmul.f32 0.25, %v36_v0  ;;  %v39_v3 = vmul.f32 0.25, %v38_v1  ;;  %v194_v26 = vmov 0.0   ;;  %s195_s1 = smov [#allocation7]  }
  0x1b   :  { %83 = vst.msk [vmem:[#allocation7] sm:$0x1] %vm82_vm1, %v194_v26  ;;  %s100_s19 = sshll.u32 %s195_s1, 4  ;;  %s101_s19 = int_to_ptr.vmem [resolvable:$true] %s100_s19 }
  0x1c   :  { %40 = vmax.xlane.f32.xlu0 %v37_v2  ;;  %s166_s20 = scalar_lea.vmem %s101_s19, 16  ;;  %s170_s21 = scalar_lea.vmem %s101_s19, 32 }
  0x1d   :  { %p167_p10 = scmp.ne.s32.totalorder %s101_s19, %s166_s20  ;;  %p171_p11 = scmp.lt.s32.totalorder %s101_s19, %s101_s19 }
  0x1e   :  { %p172_p12 = scmp.lt.s32.totalorder %s170_s21, %s166_s20 }
  0x20   :  { %49 = vmax.xlane.f32.xlu0 %v39_v3  ;;  %p173_p13 = por %p172_p12, %p171_p11 }
  0x22   :  { %v84_v34 = vld [vmem:[#allocation7] sm:$0x1]  ;;  %p174_p0 = pnand %p173_p13, %p167_p10 }
  0xa5   :  { %v41_v4 = vpop.xlane.xlu0 %40 }
  0xa6   :  { %v42_v5 = vsub.f32 %v37_v2, %v41_v4 }
  0xa8   :  { %v43_v6 = vmul.f32 1.442695, %v42_v5 }
  0xa9   :  { %v50_v7 = vpop.xlane.xlu0 %49 }
  0xaa   :  { %v51_v8 = vsub.f32 %v39_v3, %v50_v7  ;;  %116 = vpow2.f32 %v43_v6 }
  0xac   :  { %v52_v9 = vmul.f32 1.442695, %v51_v8  ;;  %v56_v11 = vsub.f32 %v51_v8, %v42_v5 }
  0xae   :  { %118 = vpow2.f32 %v52_v9 }
  0xb7   :  { %v117_v10 = vpop.eup %116 }
  0xb8   :  { %45 = vadd.xlane.f32.xlu1 %v117_v10 }
  0xbb   :  { %v119_v12 = vpop.eup %118 }
  0xbc   :  { %54 = vadd.xlane.f32.xlu1 %v119_v12  ;;  %v57_v13 = vmul.f32 %v119_v12, %v56_v11 }
  0xbe   :  { %58 = vadd.xlane.f32.xlu0 %v57_v13 }
 0x141   :  { %v46_v14 = vpop.xlane.xlu1 %45 }
 0x142   :  { %120 = vlog2.f32 %v46_v14 }
 0x145   :  { %v55_v15 = vpop.xlane.xlu1 %54 }
 0x146   :  { %122 = vrcp.f32 %v55_v15 }
 0x147   :  { %124 = vlog2.f32 %v55_v15  ;;  %v59_v21 = vpop.xlane.xlu0 %58 }
 0x14f   :  { %v121_v16 = vpop.eup %120 }
 0x150   :  { %v48_v19 = vmul.f32 0.6931472, %v121_v16 }
 0x153   :  { %v123_v17 = vpop.eup %122 }
 0x154   :  { %v125_v18 = vpop.eup %124  ;;  %v61_v22 = vmul.f32 %v123_v17, %v59_v21 }
 0x155   :  { %v63_v20 = vmul.f32 0.6931472, %v125_v18 }
 0x157   :  { %v64_v23 = vsub.f32 %v48_v19, %v63_v20 }
 0x159   :  { %v65_v24 = vadd.f32 %v64_v23, %v61_v22 }
 0x15b   :  { %v67_v25 = vsel %vm66_vm0, %v65_v24, 0.0 }
 0x15c   :  { %68 = vadd.xlane.f32.xlu1 %v67_v25 }
 0x1e5   :  { %v69_v27 = vpop.xlane.xlu1 %68 }
 0x1e6   :  { %v70_v28 = vrot.slane %v69_v27, 4 }
 0x1e8   :  { %v71_v29 = vadd.f32 %v70_v28, %v69_v27 }
 0x1ea   :  { %v72_v30 = vrot.slane %v71_v29, 2 }
 0x1ec   :  { %v73_v31 = vadd.f32 %v72_v30, %v71_v29 }
 0x1ee   :  { %v74_v32 = vrot.slane %v73_v31, 1 }
 0x1f0   :  { %v75_v33 = vadd.f32 %v74_v32, %v73_v31 }
 0x1f2   :  { %110 = vpush %v75_v33 }
 0x223   :  { %s111_s0 = spop %110 }
 0x224   :  { %v77_v35 = vstv %s111_s0 }
 0x225   :  { %v85_v36 = vadd.f32 %v84_v34, %v77_v35 }
 0x227   :  { %87 = vst.msk [vmem:[#allocation7] sm:$0x1] %vm82_vm1, %v85_v36 }
 0x22e   :  { %v91_v37 = vld [vmem:[#allocation7] sm:$0x1] }
 0x22f   :  { %v92_v38 = vmul.f32 2.0, %v91_v37 }
 0x231   :  { %93 = vst.msk [vmem:[#allocation7] sm:$0x1] %vm82_vm1, %v92_v38 }
 0x232   :  { %177 = shalt.err (!%p174_p0)
}
 0x233   :  { %103 = dma.vmem_to_hbm [thread:$0]  %s101_s19, 16, %s225_s2, [#allocation4]  }
 0x234   :  { %190 = dma.done.wait [#allocation4], 16  }
 0x235   :  { %191 = vsyncadd [#allocation4], 4294967280 }
 0x236   :  { %107 = vsyncpa [#allocation3], 1 }
 0x237   :  { %108 = vsyncpa [#allocation6], 1 }
 0x238   :  { %109 = vsyncpa [#allocation4], 1 }

</bundles_post_ra>
